<compile_context>
chip_gen: v7x
topology: tpu7x:2x2x1
jax: 0.10.0
libtpu: 0.0.40
codegen_flags: <defaults>
</compile_context>

<pallas_src>
import functools

import jax
import jax.numpy as jnp
import numpy as np
from jax.experimental import pallas as pl
from jax.experimental.pallas import tpu as pltpu


def _shader_kernel(pix_ref, tex_ref, img_ref, depth_ref, *, tex_h, tex_w, chans):
    t = pix_ref.shape[-1]
    u = pix_ref[0, 0:1, :]                 # (1, T) normalized u in [-1, 1]
    v = pix_ref[0, 1:2, :]                 # (1, T) normalized v
    z = pix_ref[0, 2:3, :]                 # (1, T) zbuf (top face)
    pf = pix_ref[0, 3:4, :]                # (1, T) pix_to_face as f32 (sign only)

    # F.grid_sample(align_corners=False): unnormalize to texel coordinates.
    x = (u + 1.0) * (tex_w * 0.5) - 0.5
    y = (v + 1.0) * (tex_h * 0.5) - 0.5
    x0 = jnp.floor(x)
    y0 = jnp.floor(y)
    wx1 = x - x0
    wy1 = y - y0

    # Separable selection matrices via float-domain iota compares (nested
    # where -> one fewer add; no per-pixel float->int casts, so there is no
    # dependence on saturating-cast behavior for far out-of-range coords).
    # Indices outside [0, TH)/[0, TW) match no row, so grid_sample's
    # padding_mode='zeros' falls out for free.
    fx = jax.lax.broadcasted_iota(jnp.int32, (tex_w, t), 0).astype(jnp.float32)
    fy = jax.lax.broadcasted_iota(jnp.int32, (tex_h, t), 0).astype(jnp.float32)
    sx = jnp.where(fx == x0, 1.0 - wx1, jnp.where(fx == x0 + 1.0, wx1, 0.0))
    sy = jnp.where(fy == y0, 1.0 - wy1, jnp.where(fy == y0 + 1.0, wy1, 0.0))

    # Stage 1 (MXU): contract the texture width against sx.
    #   tex_ref[0] is (C*TH, TW): tmp[c*TH+ty, p] = sum_tx tex[c,ty,tx]*sx[tx,p]
    tmp = jnp.dot(tex_ref[0], sx, preferred_element_type=jnp.float32)  # (C*TH, T)

    # Stage 2 (VPU mul + XLU sublane reduce): weight rows by sy, reduce over TH.
    # Pixel columns stay independent, so garbage lanes in a padded partial
    # tile cannot contaminate valid pixels (OOB output lanes are masked).
    feats = jnp.sum(tmp.reshape(chans, tex_h, t) * sy.reshape(1, tex_h, t),
                    axis=1)                                            # (C, T)

    bg = pf < 0.0                                          # (1, T) background
    img_ref[0] = jnp.where(bg, 0.0, feats).astype(img_ref.dtype)
    depth_ref[0] = jnp.where(bg, 0.0, jnp.maximum(z, 0.0)).astype(depth_ref.dtype)


def texture_shader(uv_coords, zbuf, pix_to_face, texture):
    """Pallas version of TextureShader.forward.

    Args (PyTorch conventions):
      uv_coords:   (N, H, W, K_faces, N_f) f32  -- pixels['uv_coords']
      zbuf:        (N, H, W, K_faces)      f32  -- fragments.zbuf
      pix_to_face: (N, H, W, K_faces)      int  -- fragments.pix_to_face
      texture:     (N, C, TH, TW)          f32  -- NCHW texture

    Returns:
      img:       (N, C, H, W)
      depth_img: (N, 1, H, W)
    """
    N, H, W, _, _ = uv_coords.shape
    _, C, TH, TW = texture.shape
    HW = H * W

    # hard_rgb_blend only uses the top face (k = 0) and uv[..., :2].
    uv0 = uv_coords[:, :, :, 0, :2].astype(jnp.float32)          # (N, H, W, 2)
    u = uv0[..., 0].reshape(N, 1, HW)
    v = uv0[..., 1].reshape(N, 1, HW)
    z0 = zbuf[:, :, :, 0].reshape(N, 1, HW).astype(jnp.float32)
    # Only the sign of pix_to_face is consumed; f32 cast is exact for any
    # realistic face count (< 2^24) and keeps the merged stream homogeneous.
    p0 = pix_to_face[:, :, :, 0].reshape(N, 1, HW).astype(jnp.float32)
    pix = jnp.concatenate([u, v, z0, p0], axis=1)                # (N, 4, HW)
    tex2d = texture.reshape(N, C * TH, TW).astype(jnp.float32)   # free (NCHW)

    # Pixel tile on lanes: biggest multiple of 128 (cap 8192, floor 512) such
    # that the per-tile VMEM footprint (stage-1 intermediate C*TH*T, selection
    # slabs, double-buffered I/O blocks) stays ~20 MiB after reserving room
    # for the double-buffered texture block -- safe under the 32 MiB scoped
    # limit on v5e/v6e and on v7x (64 MiB physical VMEM).
    per_pixel_f32 = 2 * C * TH + 4 * (TH + TW) + 6 * C + 32
    budget = max(4 * 1024 * 1024, 20 * 1024 * 1024 - 2 * 4 * C * TH * TW)
    cap = budget // (4 * per_pixel_f32)
    cap = max(512, min(8192, (cap // 128) * 128))
    tile_hw = HW if HW <= cap else cap
    num_hw_tiles = pl.cdiv(HW, tile_hw)
    # NOTE: huge textures (C*TH >> 4k rows) should add a texture-row reduction
    # grid axis with a VMEM accumulator (pl.when init/finalize) instead of
    # shrinking tile_hw below 512; unnecessary at these texture sizes.
    # NOTE(v7x): for MiB-scale textures, single-buffer the texture block
    # (pipeline_mode=pl.Buffered(1); its block index only changes per n) or
    # keep it in pl.ANY with one manual DMA per n to reclaim VMEM for tiles.

    kernel = functools.partial(_shader_kernel, tex_h=TH, tex_w=TW, chans=C)

    cost = pl.CostEstimate(
        flops=N * HW * (2 * C * TH * TW + 3 * C * TH + 10 * (TH + TW)),
        transcendentals=0,
        bytes_accessed=4 * N * (4 * HW + C * TH * TW + (C + 1) * HW),
    )

    img_t, depth_t = pl.pallas_call(
        kernel,
        out_shape=(jax.ShapeDtypeStruct((N, C, HW), jnp.float32),
                   jax.ShapeDtypeStruct((N, 1, HW), jnp.float32)),
        grid=(N, num_hw_tiles),
        in_specs=[
            pl.BlockSpec((1, 4, tile_hw), lambda n, h: (n, 0, h)),   # u/v/z/p2f
            pl.BlockSpec((1, C * TH, TW), lambda n, h: (n, 0, 0)),   # texture
        ],
        out_specs=(
            pl.BlockSpec((1, C, tile_hw), lambda n, h: (n, 0, h)),   # img
            pl.BlockSpec((1, 1, tile_hw), lambda n, h: (n, 0, h)),   # depth
        ),
        compiler_params=pltpu.CompilerParams(
            dimension_semantics=("parallel", "parallel"),
            vmem_limit_bytes=32 * 1024 * 1024,
        ),
        cost_estimate=cost,
    )(pix, tex2d)

    # HW is contiguous on the last axis, so NCHW falls out of a free reshape.
    img = img_t.reshape(N, C, H, W)
    depth_img = depth_t.reshape(N, 1, H, W)
    return img, depth_img


def _reference(uv_coords, zbuf, pix_to_face, texture):
    """Pure-JAX reference (gather-based grid_sample) for correctness check."""
    N, C, TH, TW = texture.shape
    _, H, W, _, _ = uv_coords.shape
    uv0 = uv_coords[:, :, :, 0, :2]
    x = (uv0[..., 0] + 1.0) * (TW * 0.5) - 0.5
    y = (uv0[..., 1] + 1.0) * (TH * 0.5) - 0.5
    x0 = jnp.floor(x)
    y0 = jnp.floor(y)
    wx1 = x - x0
    wy1 = y - y0
    tex = jnp.transpose(texture, (0, 2, 3, 1)).reshape(N, TH * TW, C)

    def gather(xi, yi, w):
        valid = (xi >= 0) & (xi < TW) & (yi >= 0) & (yi < TH)
        flat = jnp.clip(yi.astype(jnp.int32) * TW + xi.astype(jnp.int32),
                        0, TH * TW - 1)
        vals = jnp.take_along_axis(tex, flat.reshape(N, H * W, 1), axis=1)
        vals = vals.reshape(N, H, W, C)
        return jnp.where(valid[..., None], w[..., None], 0.0) * vals

    feats = (gather(x0, y0, (1 - wx1) * (1 - wy1))
             + gather(x0 + 1, y0, wx1 * (1 - wy1))
             + gather(x0, y0 + 1, (1 - wx1) * wy1)
             + gather(x0 + 1, y0 + 1, wx1 * wy1))
    bg = pix_to_face[:, :, :, 0] < 0
    img = jnp.where(bg[..., None], 0.0, feats)
    depth = jnp.where(bg, 0.0, jnp.maximum(zbuf[:, :, :, 0], 0.0))
    return (jnp.transpose(img, (0, 3, 1, 2)),
            jnp.transpose(depth[:, :, :, None], (0, 3, 1, 2)))


if __name__ == "__main__":
    # TextureShader has no learnable parameters; texture/fragments are inputs.
    N, C, H, W, K_faces = 2, 3, 16, 16, 4
    TH, TW = 16, 16

    key = jax.random.PRNGKey(0)
    k1, k2, k3, k4 = jax.random.split(key, 4)
    uv_coords = jax.random.uniform(k1, (N, H, W, K_faces, 2), jnp.float32,
                                   minval=-1.1, maxval=1.1)
    texture = jax.random.normal(k2, (N, C, TH, TW), jnp.float32)
    zbuf = jax.random.uniform(k3, (N, H, W, K_faces), jnp.float32,
                              minval=-1.0, maxval=5.0)
    pix_to_face = jax.random.randint(k4, (N, H, W, K_faces), -1, 50, jnp.int32)

    img, depth_img = texture_shader(uv_coords, zbuf, pix_to_face, texture)
    jax.block_until_ready((img, depth_img))

    img_ref, depth_ref = _reference(uv_coords, zbuf, pix_to_face, texture)
    assert img.shape == (N, C, H, W) and depth_img.shape == (N, 1, H, W)
    # f32 MXU path (multi-pass) error is ~1e-6 here; 1e-4 leaves margin while
    # still catching any structural/indexing mistakes (which are O(1)).
    assert np.allclose(np.asarray(img), np.asarray(img_ref), atol=1e-4)
    assert np.allclose(np.asarray(depth_img), np.asarray(depth_ref), atol=1e-4)

    print("KERNEL_OK")
</pallas_src>

<mosaic_0001>
module attributes {stable_mosaic.version = 11 : i64} {
  func.func @_shader_kernel(%arg0: i32, %arg1: i32, %arg2: memref<1x4x256xf32, #tpu.memory_space<vmem>>, %arg3: memref<1x48x16xf32, #tpu.memory_space<vmem>>, %arg4: memref<1x3x256xf32, #tpu.memory_space<vmem>>, %arg5: memref<1x1x256xf32, #tpu.memory_space<vmem>>) attributes {dimension_semantics = [#tpu.dimension_semantics<parallel>, #tpu.dimension_semantics<parallel>], iteration_bounds = array<i64: 2, 1>, scalar_prefetch = 0 : i64, scratch_operands = 0 : i64, tpu.core_type = #tpu.core_type<tc>, window_params = [{transform_indices = @transform_0, window_bounds = array<i64: 1, 4, 256>}, {transform_indices = @transform_1, window_bounds = array<i64: 1, 48, 16>}, {transform_indices = @transform_2, window_bounds = array<i64: 1, 3, 256>}, {transform_indices = @transform_3, window_bounds = array<i64: 1, 1, 256>}]} {
    %c0 = arith.constant 0 : index
    %c0_0 = arith.constant 0 : index
    %c0_1 = arith.constant 0 : index
    %0 = vector.load %arg2[%c0, %c0_0, %c0_1] : memref<1x4x256xf32, #tpu.memory_space<vmem>>, vector<1x1x256xf32>
    %1 = vector.shape_cast %0 : vector<1x1x256xf32> to vector<1x256xf32>
    %c0_2 = arith.constant 0 : index
    %c1 = arith.constant 1 : index
    %c0_3 = arith.constant 0 : index
    %2 = vector.load %arg2[%c0_2, %c1, %c0_3] : memref<1x4x256xf32, #tpu.memory_space<vmem>>, vector<1x1x256xf32>
    %3 = vector.shape_cast %2 : vector<1x1x256xf32> to vector<1x256xf32>
    %c0_4 = arith.constant 0 : index
    %c2 = arith.constant 2 : index
    %c0_5 = arith.constant 0 : index
    %4 = vector.load %arg2[%c0_4, %c2, %c0_5] : memref<1x4x256xf32, #tpu.memory_space<vmem>>, vector<1x1x256xf32>
    %5 = vector.shape_cast %4 : vector<1x1x256xf32> to vector<1x256xf32>
    %c0_6 = arith.constant 0 : index
    %c3 = arith.constant 3 : index
    %c0_7 = arith.constant 0 : index
    %6 = vector.load %arg2[%c0_6, %c3, %c0_7] : memref<1x4x256xf32, #tpu.memory_space<vmem>>, vector<1x1x256xf32>
    %7 = vector.shape_cast %6 : vector<1x1x256xf32> to vector<1x256xf32>
    %cst = arith.constant 1.000000e+00 : f32
    %8 = vector.broadcast %cst : f32 to vector<1x256xf32>
    %9 = arith.addf %1, %8 : vector<1x256xf32>
    %cst_8 = arith.constant 8.000000e+00 : f32
    %10 = vector.broadcast %cst_8 : f32 to vector<1x256xf32>
    %11 = arith.mulf %9, %10 : vector<1x256xf32>
    %cst_9 = arith.constant 5.000000e-01 : f32
    %12 = vector.broadcast %cst_9 : f32 to vector<1x256xf32>
    %13 = arith.subf %11, %12 : vector<1x256xf32>
    %cst_10 = arith.constant 1.000000e+00 : f32
    %14 = vector.broadcast %cst_10 : f32 to vector<1x256xf32>
    %15 = arith.addf %3, %14 : vector<1x256xf32>
    %cst_11 = arith.constant 8.000000e+00 : f32
    %16 = vector.broadcast %cst_11 : f32 to vector<1x256xf32>
    %17 = arith.mulf %15, %16 : vector<1x256xf32>
    %cst_12 = arith.constant 5.000000e-01 : f32
    %18 = vector.broadcast %cst_12 : f32 to vector<1x256xf32>
    %19 = arith.subf %17, %18 : vector<1x256xf32>
    %20 = math.floor %13 : vector<1x256xf32>
    %21 = math.floor %19 : vector<1x256xf32>
    %22 = arith.subf %13, %20 : vector<1x256xf32>
    %23 = arith.subf %19, %21 : vector<1x256xf32>
    %24 = tpu.iota {dimensions = array<i32: 0>} : vector<16x256xi32>
    %25 = arith.sitofp %24 : vector<16x256xi32> to vector<16x256xf32>
    %26 = tpu.iota {dimensions = array<i32: 0>} : vector<16x256xi32>
    %27 = arith.sitofp %26 : vector<16x256xi32> to vector<16x256xf32>
    %28 = vector.broadcast %20 : vector<1x256xf32> to vector<16x256xf32>
    %29 = arith.cmpf oeq, %25, %28 : vector<16x256xf32>
    %cst_13 = arith.constant 1.000000e+00 : f32
    %30 = vector.broadcast %cst_13 : f32 to vector<1x256xf32>
    %31 = arith.subf %30, %22 : vector<1x256xf32>
    %cst_14 = arith.constant 1.000000e+00 : f32
    %32 = vector.broadcast %cst_14 : f32 to vector<1x256xf32>
    %33 = arith.addf %20, %32 : vector<1x256xf32>
    %34 = vector.broadcast %33 : vector<1x256xf32> to vector<16x256xf32>
    %35 = arith.cmpf oeq, %25, %34 : vector<16x256xf32>
    %cst_15 = arith.constant 0.000000e+00 : f32
    %36 = vector.shape_cast %22 : vector<1x256xf32> to vector<1x256xf32>
    %37 = vector.broadcast %36 : vector<1x256xf32> to vector<16x256xf32>
    %38 = vector.broadcast %cst_15 : f32 to vector<16x256xf32>
    %39 = arith.select %35, %37, %38 : vector<16x256xi1>, vector<16x256xf32>
    %40 = vector.shape_cast %31 : vector<1x256xf32> to vector<1x256xf32>
    %41 = vector.broadcast %40 : vector<1x256xf32> to vector<16x256xf32>
    %42 = arith.select %29, %41, %39 : vector<16x256xi1>, vector<16x256xf32>
    %43 = vector.broadcast %21 : vector<1x256xf32> to vector<16x256xf32>
    %44 = arith.cmpf oeq, %27, %43 : vector<16x256xf32>
    %cst_16 = arith.constant 1.000000e+00 : f32
    %45 = vector.broadcast %cst_16 : f32 to vector<1x256xf32>
    %46 = arith.subf %45, %23 : vector<1x256xf32>
    %cst_17 = arith.constant 1.000000e+00 : f32
    %47 = vector.broadcast %cst_17 : f32 to vector<1x256xf32>
    %48 = arith.addf %21, %47 : vector<1x256xf32>
    %49 = vector.broadcast %48 : vector<1x256xf32> to vector<16x256xf32>
    %50 = arith.cmpf oeq, %27, %49 : vector<16x256xf32>
    %cst_18 = arith.constant 0.000000e+00 : f32
    %51 = vector.shape_cast %23 : vector<1x256xf32> to vector<1x256xf32>
    %52 = vector.broadcast %51 : vector<1x256xf32> to vector<16x256xf32>
    %53 = vector.broadcast %cst_18 : f32 to vector<16x256xf32>
    %54 = arith.select %50, %52, %53 : vector<16x256xi1>, vector<16x256xf32>
    %55 = vector.shape_cast %46 : vector<1x256xf32> to vector<1x256xf32>
    %56 = vector.broadcast %55 : vector<1x256xf32> to vector<16x256xf32>
    %57 = arith.select %44, %56, %54 : vector<16x256xi1>, vector<16x256xf32>
    %c0_19 = arith.constant 0 : index
    %c0_20 = arith.constant 0 : index
    %c0_21 = arith.constant 0 : index
    %58 = vector.load %arg3[%c0_19, %c0_20, %c0_21] : memref<1x48x16xf32, #tpu.memory_space<vmem>>, vector<1x48x16xf32>
    %59 = vector.shape_cast %58 : vector<1x48x16xf32> to vector<48x16xf32>
    %cst_22 = arith.constant dense<0.000000e+00> : vector<48x256xf32>
    %60 = tpu.matmul %59, %42, %cst_22 {dimension_numbers = #tpu.dot_dimension_numbers<[1], [0], [0], [1], [0, 0, 1, 1], [], []>} : vector<48x16xf32>, vector<16x256xf32>, vector<48x256xf32> -> vector<48x256xf32>
    %61 = vector.shape_cast %60 : vector<48x256xf32> to vector<3x16x256xf32>
    %62 = vector.shape_cast %57 : vector<16x256xf32> to vector<1x16x256xf32>
    %63 = vector.broadcast %62 : vector<1x16x256xf32> to vector<3x16x256xf32>
    %64 = arith.mulf %61, %63 : vector<3x16x256xf32>
    %cst_23 = arith.constant dense<0.000000e+00> : vector<3x256xf32>
    %65 = vector.multi_reduction <add>, %64, %cst_23 [1] : vector<3x16x256xf32> to vector<3x256xf32>
    %cst_24 = arith.constant 0.000000e+00 : f32
    %66 = vector.broadcast %cst_24 : f32 to vector<1x256xf32>
    %67 = arith.cmpf olt, %7, %66 : vector<1x256xf32>
    %cst_25 = arith.constant 0.000000e+00 : f32
    %68 = vector.shape_cast %67 : vector<1x256xi1> to vector<1x256xi1>
    %69 = vector.broadcast %68 : vector<1x256xi1> to vector<3x256xi1>
    %70 = vector.broadcast %cst_25 : f32 to vector<3x256xf32>
    %71 = arith.select %69, %70, %65 : vector<3x256xi1>, vector<3x256xf32>
    %c0_26 = arith.constant 0 : index
    %c0_27 = arith.constant 0 : index
    %c0_28 = arith.constant 0 : index
    %72 = vector.load %arg4[%c0_26, %c0_27, %c0_28] : memref<1x3x256xf32, #tpu.memory_space<vmem>>, vector<1x3x256xf32>
    %73 = vector.shape_cast %72 : vector<1x3x256xf32> to vector<3x256xf32>
    %74 = vector.shape_cast %71 : vector<3x256xf32> to vector<1x3x256xf32>
    tpu.vector_store %arg4[%c0_26, %c0_27, %c0_28], %74 {strides = array<i32>} : memref<1x3x256xf32, #tpu.memory_space<vmem>>, vector<1x3x256xf32>,
    %cst_29 = arith.constant 0.000000e+00 : f32
    %75 = vector.broadcast %cst_29 : f32 to vector<1x256xf32>
    %76 = arith.maximumf %5, %75 : vector<1x256xf32>
    %cst_30 = arith.constant 0.000000e+00 : f32
    %77 = vector.broadcast %cst_30 : f32 to vector<1x256xf32>
    %78 = arith.select %67, %77, %76 : vector<1x256xi1>, vector<1x256xf32>
    %c0_31 = arith.constant 0 : index
    %c0_32 = arith.constant 0 : index
    %c0_33 = arith.constant 0 : index
    %79 = vector.load %arg5[%c0_31, %c0_32, %c0_33] : memref<1x1x256xf32, #tpu.memory_space<vmem>>, vector<1x1x256xf32>
    %80 = vector.shape_cast %79 : vector<1x1x256xf32> to vector<1x256xf32>
    %81 = vector.shape_cast %78 : vector<1x256xf32> to vector<1x1x256xf32>
    tpu.vector_store %arg5[%c0_31, %c0_32, %c0_33], %81 {strides = array<i32>} : memref<1x1x256xf32, #tpu.memory_space<vmem>>, vector<1x1x256xf32>,
    return
  }
  func.func @transform_0(%arg0: i32, %arg1: i32) -> (i32, i32, i32) {
    %c0_i32 = arith.constant 0 : i32
    %c0_i32_0 = arith.constant 0 : i32
    return %arg0, %c0_i32, %arg1 : i32, i32, i32
  }
  func.func @transform_1(%arg0: i32, %arg1: i32) -> (i32, i32, i32) {
    %c0_i32 = arith.constant 0 : i32
    %c0_i32_0 = arith.constant 0 : i32
    %c0_i32_1 = arith.constant 0 : i32
    return %arg0, %c0_i32, %c0_i32_0 : i32, i32, i32
  }
  func.func @transform_2(%arg0: i32, %arg1: i32) -> (i32, i32, i32) {
    %c0_i32 = arith.constant 0 : i32
    %c0_i32_0 = arith.constant 0 : i32
    return %arg0, %c0_i32, %arg1 : i32, i32, i32
  }
  func.func @transform_3(%arg0: i32, %arg1: i32) -> (i32, i32, i32) {
    %c0_i32 = arith.constant 0 : i32
    %c0_i32_0 = arith.constant 0 : i32
    return %arg0, %c0_i32, %arg1 : i32, i32, i32
  }
}

</mosaic_0001>

<bundles_post_ra>
// kernel: tpu_custom_call.1
= control target key start
LH: loop header
LB: loop body
LE: loop exit
PB: predicated region body
PF: predicated region fallthrough
CT: control target
= control target key end

     0   :  { %9 = vsyncpa [#allocation3], 0  ;;  %s1153_s0 = inlined_call_operand.vmem [shape: f32[2,4,256], index: 0, kind: input, shape index: {}]   ;;  %s1154_s1 = inlined_call_operand.vmem [shape: f32[2,48,16], index: 1, kind: input, shape index: {}]   ;;  %s1155_s2 = inlined_call_operand.vmem [shape: f32[2,3,256], index: 2, kind: output, shape index: {0}]   ;;  %s1156_s3 = inlined_call_operand.hbm [shape: f32[2,1,256], index: 3, kind: output, shape index: {1}]  }
   0x1   :  { %11 = vsyncpa [#allocation3 + $0x1], 0  ;;  %s962_s12 = smov 0   ;;  %s964_s13 = smov 0  }
   0x2   :  { %s966_s14 = smov 0   ;;  %s968_s15 = smov 0  }
   0x3   :  { %s970_s16 = smov 0   ;;  %s972_s17 = smov 0  }
   0x4 LB: > { %s765_s18 = sadd.s32 4294967295, %s937_s17   ;;  %s766_s19 = sadd.s32 4294967294, %s937_s17   ;;  %s937_s17 = sphi %s972_s17, %s17_s17   ;;  %s933_s16 = sphi %s970_s16, %s1163_s16   ;;  %s929_s15 = sphi %s968_s15, %s1162_s15   ;;  %s925_s14 = sphi %s966_s14, %s1161_s14   ;;  %s921_s13 = sphi %s964_s13, %s1160_s13   ;;  %s917_s12 = sphi %s962_s12, %s1159_s12  }
   0x5   : > { %s29_s20 = sadd.s32 1, %s933_s16  ;;  %s120_s21 = sadd.s32 1, %s925_s14 }
   0x6   : > { %p31_p0 = scmp.ge.s32.totalorder %s29_s20, 2  ;;  %p130_p1 = scmp.ne.s32.totalorder %s925_s14, %s921_s13 }
   0x7   : > { %p131_p2 = scmp.eq.s32.totalorder %s765_s18, 1  ;;  %p136_p3 = scmp.ne.s32.totalorder %s921_s13, %s917_s12 }
   0x8   : > { %s1165_s20 = smov (%p31_p0, %s29_s20), 0  ;;  %p137_p5 = scmp.eq.s32.totalorder %s766_s19, 1 }
   0x9   : > { %p1002_p4 = por %p131_p2, %p130_p1  ;;  %s115_s23 = ssub.s32 %s933_s16, %s1165_s20 }
   0xa   : > { %p769_p6 = scmp.ge.s32.totalorder %s937_s17, 1  ;;  %p118_p7 = scmp.eq.s32.totalorder %s115_s23, 0 }
   0xb   : > { %p1009_p8 = por %p137_p5, %p136_p3  ;;  %p176_p9 = scmp.lt.s32.totalorder %s937_s17, 3 }
   0xc   : > { %s1015_s25 = scalar_select %p118_p7, %s925_s14, %s120_s21  }
   0xd   : > { %p177_p10 = pnand %p769_p6, %p176_p9 }
   0xe   : > { %p219_p11 = scmp.lt.s32.totalorder (!%p177_p10), %s929_s15, 1  ;;  %v261_v0 = vlaneseq (!%p177_p10)  ;;  %v939_v1 = vmov (!%p177_p10), 0.0   ;;  %vm396_vm8 = vcmask (!%p177_p10), 130048   ;;  %s215_s8 = sand.u32 (!%p177_p10), 1, %s921_s13  }
   0xf   : > { %180 = sbr.rel (%p177_p10) target bundleno = 293 (0x125), region = 28  ;;  %479 = vmatprep.mubr.f32.mxu0 (!%p177_p10), %v939_v1  ;;  %497 = vmatprep.mubr.f32.mxu1 (!%p177_p10), %v939_v1  ;;  %s770_s9 = sshll.u32 (!%p177_p10), %s215_s8, 1 }
  0x10   : > { %v262_v2 = vshrl.u32 (!%p177_p10), %v261_v0, 7  ;;  %vm607_vm10 = vcmp.lt.s32.totalorder (!%p177_p10), %v261_v0, 256  ;;  %s794_s10 = sshll.u32 (!%p177_p10), %s929_s15, 5  ;;  %s217_s11 = scalar_lea.vmem (!%p177_p10), [#allocation2], %s770_s9 }
  0x11   : > { %s640_s18 = sshll.u32 (!%p177_p10), %s217_s11, 4  ;;  %s1086_s23 = scalar_lea.hbm (!%p177_p10), %s1156_s3, %s794_s10  ;;  %s641_s18 = int_to_ptr.vmem [resolvable:$true] %s640_s18 }
  0x12   : > { %v263_v6 = vadd.s32 (!%p177_p10), 8, %v262_v2  ;;  %v1033_v8 = vsub.s32 (!%p177_p10), 1, %v262_v2  ;;  %v1035_v9 = vsub.s32 (!%p177_p10), 0, %v262_v2  ;;  %v1037_v11 = vcvt.s32.f32 (!%p177_p10), %v262_v2  ;;  %s620_s28 = scalar_lea.sflag (!%p177_p10), [#allocation3], %s215_s8  ;;  %s859_s29 = scalar_lea.vmem (!%p177_p10), %s641_s18, 32 }
  0x13   : > { %p860_p12 = scmp.ne.s32.totalorder (!%p177_p10), %s641_s18, %s859_s29 }
  0x14   : > { %v1039_v12 = vcvt.s32.f32 (!%p177_p10), %v263_v6 }
  0x15   : > { %p861_p13 = pnand (!%p177_p10), %p860_p12, %p1002_p4 }
  0x16   : > { %s1021_s26 = scalar_select %p219_p11, %s929_s15, 1 }
  0x17   : > { %p862_p0 = pneg %p861_p13 }
  0x18   : > { %s792_s27 = sshll.u32 %s1021_s26, 3  ;;  %s801_s4 = smul.u32 48, %s1021_s26 }
  0x19   : > { %s1029_s30 = scalar_lea.vmem %s1153_s0, %s792_s27 }
  0x1a   : > { %v244_v3 = vld [vmem:[%s1029_s30] ss:$4 sm:$0x3]  ;;  %s232_s7 = scalar_lea.vmem %s1154_s1, %s801_s4  ;;  %v1074_v40 = vld [vmem:[%s1029_s30 + $0x3] ss:$4 sm:$0x3] }
  0x1b   : > { %v251_v4 = vadd.f32 1.0, %v244_v3  ;;  %v390_v34 = vld [vmem:[%s232_s7] sm:$0xff]  ;;  %v393_v35 = vld [vmem:[%s232_s7 + $0x18] sm:$0xff]  ;;  %v391_v36 = vld [vmem:[%s232_s7 + $0x8] sm:$0xff]  ;;  %vm570_vm9 = vcmp.lt.f32.partialorder %v1074_v40, 0.0  ;;  %s940_s4 = smov [#allocation2]  }
  0x1c   : > { %v394_v37 = vld [vmem:[%s232_s7 + $0x20] sm:$0xff]  ;;  %v392_v38 = vld [vmem:[%s232_s7 + $0x10] sm:$0xff]  ;;  %v395_v39 = vld [vmem:[%s232_s7 + $0x28] sm:$0xff]  ;;  %s863_s5 = sshll.u32 %s940_s4, 4  ;;  %s864_s5 = int_to_ptr.vmem [resolvable:$false] %s863_s5 }
  0x1d   : > { %v252_v5 = vmul.f32 8.0, %v251_v4  ;;  %v777_v41 = vld [vmem:[%s1029_s30 + $0x2] ss:$4 sm:$0x3]  ;;  %s865_s6 = scalar_lea.vmem %s864_s5, 64  ;;  %p866_p1 = scmp.lt.s32.totalorder %s641_s18, %s864_s5 }
  0x1e   : > { %v603_v42 = vmax.f32 %v777_v41, 0.0  ;;  %p867_p2 = scmp.lt.s32.totalorder %s865_s6, %s859_s29 }
  0x1f   : > { %v779_v7 = vadd.f32 -0.5, %v252_v5 }
  0x20   : > { %v604_v43 = vsel %vm570_vm9, 0.0, %v603_v42  ;;  %p868_p3 = por %p867_p2, %p866_p1 }
  0x21   : > { %v257_v10 = vfloor.f32 %v779_v7  ;;  %609 = vst.msk [vmem:[%s217_s11] sm:$0x3] %vm607_vm10, %v604_v43 }
  0x22   : > { %p869_p5 = pnand %p868_p3, %p862_p0 }
  0x23   : > { %v259_v13 = vsub.f32 %v779_v7, %v257_v10  ;;  %v274_v14 = vrot.slane %v257_v10, %v1033_v8  ;;  %v282_v15 = vadd.f32 1.0, %v257_v10  ;;  %v270_v16 = vrot.slane %v257_v10, %v1035_v9 }
  0x25   : > { %vm278_vm0 = vcmp.eq.f32.partialorder %v1037_v11, %v274_v14  ;;  %vm280_vm1 = vcmp.eq.f32.partialorder %v1039_v12, %v274_v14  ;;  %v281_v17 = vsub.f32 1.0, %v259_v13  ;;  %v291_v18 = vrot.slane %v282_v15, %v1033_v8 }
  0x26   : > { %v306_v19 = vrot.slane %v259_v13, %v1033_v8  ;;  %vm277_vm2 = vcmp.eq.f32.partialorder %v1037_v11, %v270_v16  ;;  %vm279_vm3 = vcmp.eq.f32.partialorder %v1039_v12, %v270_v16  ;;  %v287_v20 = vrot.slane %v282_v15, %v1035_v9 }
  0x27   : > { %vm295_vm4 = vcmp.eq.f32.partialorder %v1037_v11, %v291_v18  ;;  %vm297_vm5 = vcmp.eq.f32.partialorder %v1039_v12, %v291_v18  ;;  %v321_v21 = vrot.slane %v281_v17, %v1033_v8  ;;  %v302_v22 = vrot.slane %v259_v13, %v1035_v9 }
  0x28   : > { %v310_v23 = vsel %vm295_vm4, %v306_v19, 0.0  ;;  %v312_v24 = vsel %vm297_vm5, %v306_v19, 0.0  ;;  %vm294_vm6 = vcmp.eq.f32.partialorder %v1037_v11, %v287_v20  ;;  %vm296_vm7 = vcmp.eq.f32.partialorder %v1039_v12, %v287_v20 }
  0x29   : > { %v325_v25 = vsel %vm278_vm0, %v321_v21, %v310_v23  ;;  %v327_v26 = vsel %vm280_vm1, %v321_v21, %v312_v24  ;;  %v309_v27 = vsel %vm294_vm6, %v302_v22, 0.0  ;;  %v311_v28 = vsel %vm296_vm7, %v302_v22, 0.0 }
  0x2a   : > { %v795_v29 = vpack.c.bf16 %v327_v26, %v325_v25  ;;  %v317_v30 = vrot.slane %v281_v17, %v1035_v9 }
  0x2c   : > { %796 = vmatprep.subr.bf16.mxu0 %v795_v29  ;;  %799 = vmatprep.subr.bf16.mxu1 %v795_v29  ;;  %v324_v31 = vsel %vm277_vm2, %v317_v30, %v309_v27  ;;  %v326_v32 = vsel %vm279_vm3, %v317_v30, %v311_v28 }
  0x2d   : > { %v797_v33 = vpack.c.bf16 %v326_v32, %v324_v31 }
  0x2f   : > { %798 = vmatpush1.bf16.msra.mxu0 %v797_v33  ;;  %800 = vmatpush1.bf16.msra.mxu1 %v797_v33 }
  0x32   : > { %781 = vmatmul.mubr.msk.f32.vlgmr.msra.gmra.mrb[0].mxu0 %vm396_vm8, %v390_v34  ;;  %784 = vmatmul.mubr.msk.f32.vlgmr.msra.gmra.mrb[0].mxu1 %vm396_vm8, %v393_v35 }
  0x33   : > { %485 = vmatprep.mubr.f32.mxu0 %v939_v1  ;;  %503 = vmatprep.mubr.f32.mxu1 %v939_v1 }
  0x36   : > { %782 = vmatmul.mubr.msk.f32.gmra.mrb[2].mxu0 %vm396_vm8, %v391_v36  ;;  %785 = vmatmul.mubr.msk.f32.gmra.mrb[2].mxu1 %vm396_vm8, %v394_v37 }
  0x37   : > { %491 = vmatprep.mubr.f32.mxu0 %v939_v1  ;;  %509 = vmatprep.mubr.f32.mxu1 %v939_v1 }
  0x3a   : > { %783 = vmatmul.mubr.msk.f32.gmra.mrb[4].mxu0 %vm396_vm8, %v392_v38  ;;  %786 = vmatmul.mubr.msk.f32.gmra.mrb[4].mxu1 %vm396_vm8, %v395_v39 }
  0x3b   : > { %872 = shalt.err (!%p869_p5)
}
  0x3c   : > { %s873_s15 = scalar_lea.hbm %s1086_s23, 32  ;;  %s877_s9 = scalar_lea.hbm %s1156_s3, 64 }
  0x3d   : > { %p874_p6 = scmp.ne.s32.totalorder %s1086_s23, %s873_s15  ;;  %p878_p10 = scmp.lt.u32.totalorder %s1086_s23, %s1156_s3 }
  0x3e   : > { %p879_p11 = scmp.lt.u32.totalorder %s877_s9, %s873_s15  ;;  %p881_p13 = scmp.lt.u32.totalorder %s873_s15, %s1086_s23 }
  0x3f   : > { %p875_p7 = pnand %p874_p6, %p1002_p4 }
  0x40   : > { %p880_p12 = por %p879_p11, %p878_p10 }
  0x41   : > { %p876_p9 = pneg %p875_p7 }
  0x42   : > { %p882_p0 = por %p881_p13, %p880_p12 }
  0x44   : > { %p883_p1 = pnand %p882_p0, %p876_p9 }
  0x46   : > { %886 = shalt.err (!%p883_p1)
}
  0x47   : > { %802 = dma.vmem_to_hbm [thread:$0]  (%p1002_p4), %s641_s18, 32, %s1086_s23, %s620_s28   ;;  %v776_v44 = vld [vmem:[%s1029_s30 + $0x1] ss:$4 sm:$0x3]  ;;  %vm588_vm3 = vcmask 1041409   ;;  %vm590_vm4 = vcmask 1042434  }
  0x48   : > { %v254_v45 = vadd.f32 1.0, %v776_v44  ;;  %s241_s18 = scalar_lea.vmem %s1155_s2, %s792_s27 }
  0x4a   : > { %v255_v46 = vmul.f32 8.0, %v254_v45 }
  0x4c   : > { %v780_v47 = vadd.f32 -0.5, %v255_v46 }
  0x4e   : > { %v258_v48 = vfloor.f32 %v780_v47 }
  0x50   : > { %v344_v49 = vadd.f32 1.0, %v258_v48  ;;  %v260_v50 = vsub.f32 %v780_v47, %v258_v48  ;;  %v332_v54 = vrot.slane %v258_v48, %v1035_v9  ;;  %v336_v56 = vrot.slane %v258_v48, %v1033_v8 }
  0x52   : > { %v349_v51 = vrot.slane %v344_v49, %v1035_v9  ;;  %v353_v52 = vrot.slane %v344_v49, %v1033_v8  ;;  %v343_v53 = vsub.f32 1.0, %v260_v50  ;;  %v364_v55 = vrot.slane %v260_v50, %v1035_v9 }
  0x53   : > { %v368_v57 = vrot.slane %v260_v50, %v1033_v8  ;;  %vm339_vm14 = vcmp.eq.f32.partialorder %v1037_v11, %v332_v54  ;;  %vm340_vm0 = vcmp.eq.f32.partialorder %v1037_v11, %v336_v56  ;;  %vm341_vm1 = vcmp.eq.f32.partialorder %v1039_v12, %v332_v54 }
  0x54   : > { %vm356_vm11 = vcmp.eq.f32.partialorder %v1037_v11, %v349_v51  ;;  %vm357_vm12 = vcmp.eq.f32.partialorder %v1037_v11, %v353_v52  ;;  %v379_v58 = vrot.slane %v343_v53, %v1035_v9  ;;  %vm358_vm13 = vcmp.eq.f32.partialorder %v1039_v12, %v349_v51 }
  0x55   : > { %v371_v59 = vsel %vm356_vm11, %v364_v55, 0.0  ;;  %v383_v60 = vrot.slane %v343_v53, %v1033_v8  ;;  %vm359_vm15 = vcmp.eq.f32.partialorder %v1039_v12, %v353_v52  ;;  %v372_v63 = vsel %vm357_vm12, %v368_v57, 0.0 }
  0x56   : > { %v373_v0 = vsel %vm358_vm13, %v364_v55, 0.0  ;;  %v386_v3 = vsel %vm339_vm14, %v379_v58, %v371_v59  ;;  %vm342_vm2 = vcmp.eq.f32.partialorder %v1039_v12, %v336_v56  ;;  %v374_v4 = vsel %vm359_vm15, %v368_v57, 0.0 }
  0x57   : > { %v387_v5 = vsel %vm340_vm0, %v383_v60, %v372_v63  ;;  %v388_v6 = vsel %vm341_vm1, %v379_v58, %v373_v0  ;;  %v389_v14 = vsel %vm342_vm2, %v383_v60, %v374_v4  ;;  %v941_v55 = vmov 0  }
  0x58   : > { %v571_v56 = vsel %vm570_vm9, 1, %v941_v55 }
  0x59   : > { %v579_v4 = vrot.slane %v571_v56, %v1033_v8 }
  0x5b   : > { %vm581_vm6 = vcmp.eq.s32.totalorder %v579_v4, 1 }
 0x105   : > { %v481_v61 = vpop.f32.mrb[0].mxu0  ;;  %v499_v62 = vpop.f32.mrb[0].mxu1 }
 0x106   : > { %v483_v1 = vpop.f32.mrb[1].mxu0  ;;  %v501_v2 = vpop.f32.mrb[1].mxu1  ;;  %v516_v13 = vmul.f32 %v481_v61, %v386_v3  ;;  %v522_v20 = vmul.f32 %v499_v62, %v388_v6 }
 0x107   : > { %v517_v11 = vmul.f32 %v483_v1, %v387_v5  ;;  %v523_v21 = vmul.f32 %v501_v2, %v389_v14  ;;  %v575_v1 = vrot.slane %v571_v56, %v1035_v9 }
 0x109   : > { %v487_v7 = vpop.f32.mrb[2].mxu0  ;;  %v505_v10 = vpop.f32.mrb[2].mxu1  ;;  %vm580_vm5 = vcmp.eq.s32.totalorder %v575_v1, 1 }
 0x10a   : > { %v518_v15 = vmul.f32 %v487_v7, %v388_v6  ;;  %v489_v16 = vpop.f32.mrb[3].mxu0  ;;  %v507_v17 = vpop.f32.mrb[3].mxu1  ;;  %v524_v12 = vmul.f32 %v505_v10, %v386_v3 }
 0x10b   : > { %v519_v18 = vmul.f32 %v489_v16, %v389_v14  ;;  %v525_v31 = vmul.f32 %v507_v17, %v387_v5 }
 0x10c   : > { %v528_v19 = vadd.f32 %v518_v15, %v516_v13 }
 0x10d   : > { %v535_v22 = vadd.f32 %v519_v18, %v517_v11  ;;  %v493_v23 = vpop.f32.mrb[4].mxu0  ;;  %v511_v24 = vpop.f32.mrb[4].mxu1 }
 0x10e   : > { %v529_v25 = vrot.slane %v528_v19, 4  ;;  %v520_v26 = vmul.f32 %v493_v23, %v386_v3  ;;  %v526_v27 = vmul.f32 %v511_v24, %v388_v6  ;;  %v495_v28 = vpop.f32.mrb[5].mxu0  ;;  %v513_v29 = vpop.f32.mrb[5].mxu1 }
 0x10f   : > { %v536_v30 = vrot.slane %v535_v22, 4  ;;  %v521_v32 = vmul.f32 %v495_v28, %v387_v5  ;;  %v527_v33 = vmul.f32 %v513_v29, %v389_v14 }
 0x110   : > { %v530_v34 = vadd.f32 %v529_v25, %v528_v19  ;;  %v542_v35 = vadd.f32 %v522_v20, %v520_v26  ;;  %v556_v36 = vadd.f32 %v526_v27, %v524_v12 }
 0x111   : > { %v537_v37 = vadd.f32 %v536_v30, %v535_v22  ;;  %v549_v38 = vadd.f32 %v523_v21, %v521_v32  ;;  %v563_v39 = vadd.f32 %v527_v33, %v525_v31 }
 0x112   : > { %v531_v41 = vrot.slane %v530_v34, 2  ;;  %v543_v42 = vrot.slane %v542_v35, 4  ;;  %v557_v43 = vrot.slane %v556_v36, 4 }
 0x113   : > { %v538_v44 = vrot.slane %v537_v37, 2  ;;  %v550_v45 = vrot.slane %v549_v38, 4  ;;  %v564_v46 = vrot.slane %v563_v39, 4 }
 0x114   : > { %v532_v47 = vadd.f32 %v531_v41, %v530_v34  ;;  %v544_v48 = vadd.f32 %v543_v42, %v542_v35  ;;  %v558_v49 = vadd.f32 %v557_v43, %v556_v36 }
 0x115   : > { %v539_v50 = vadd.f32 %v538_v44, %v537_v37  ;;  %v551_v51 = vadd.f32 %v550_v45, %v549_v38  ;;  %v565_v52 = vadd.f32 %v564_v46, %v563_v39 }
 0x116   : > { %v545_v53 = vrot.slane %v544_v48, 2  ;;  %v559_v54 = vrot.slane %v558_v49, 2  ;;  %v533_v59 = vrot.slane %v532_v47, 1 }
 0x117   : > { %v552_v57 = vrot.slane %v551_v51, 2  ;;  %v566_v58 = vrot.slane %v565_v52, 2  ;;  %v540_v62 = vrot.slane %v539_v50, 1 }
 0x118   : > { %v546_v60 = vadd.f32 %v545_v53, %v544_v48  ;;  %v560_v61 = vadd.f32 %v559_v54, %v558_v49  ;;  %v534_v40 = vadd.f32 %v533_v59, %v532_v47 }
 0x119   : > { %v553_v63 = vadd.f32 %v552_v57, %v551_v51  ;;  %v567_v0 = vadd.f32 %v566_v58, %v565_v52  ;;  %v541_v13 = vadd.f32 %v540_v62, %v539_v50 }
 0x11a   : > { %v547_v2 = vrot.slane %v546_v60, 1  ;;  %v561_v3 = vrot.slane %v560_v61, 1 }
 0x11b   : > { %v554_v5 = vrot.slane %v553_v63, 1  ;;  %v568_v6 = vrot.slane %v567_v0, 1 }
 0x11c   : > { %v548_v7 = vadd.f32 %v547_v2, %v546_v60  ;;  %v562_v10 = vadd.f32 %v561_v3, %v560_v61 }
 0x11d   : > { %v555_v14 = vadd.f32 %v554_v5, %v553_v63  ;;  %v569_v15 = vadd.f32 %v568_v6, %v567_v0 }
 0x11e   : > { %v589_v16 = vsel %vm588_vm3, %v548_v7, %v534_v40 }
 0x11f   : > { %v592_v17 = vsel %vm588_vm3, %v555_v14, %v541_v13  ;;  %v591_v9 = vsel %vm590_vm4, %v562_v10, %v589_v16 }
 0x120   : > { %v593_v11 = vsel %vm590_vm4, %v569_v15, %v592_v17  ;;  %v596_v18 = vsel %vm580_vm5, 0.0, %v591_v9 }
 0x121   : > { %v597_v8 = vsel %vm581_vm6, 0.0, %v593_v11 }
 0x122   : > { %v600_v19 = vcombine.low %v596_v18, %v597_v8 }
 0x124   : > { %602 = vst [vmem:[%s241_s18] sm:$0x77] %v600_v19 }
 0x125 PF: > { %p808_p4 = scmp.ge.s32.totalorder %s937_s17, 2  ;;  %s664_s19 = sand.u32 1, %s917_s12  }
 0x126   : > { %s665_s21 = scalar_lea.sflag [#allocation3], %s664_s19 }
 0x127   : > { %p805_p2 = pnand %p808_p4, %p1009_p8 }
 0x129   : > { %912 = dma.done.wait (!%p805_p2), %s665_s21, 32  }
 0x12a   : > { %914 = vsyncadd (!%p805_p2), %s665_s21, 4294967264  ;;  %s17_s17 = sadd.s32 1, %s937_s17   ;;  %s1159_s12 = smov %s921_s13 }
 0x12b   : > { %p14_p3 = scmp.ge.s32.totalorder %s17_s17, 4   ;;  %s1160_s13 = smov %s925_s14 }
 0x12c   : > { %s1161_s14 = smov %s1015_s25  ;;  %s1162_s15 = smov %s933_s16 }
 0x12d   : > { %s1163_s16 = smov %s1165_s20  ;;  %16 = sbr.rel (!%p14_p3) target bundleno = 4 (0x4), region = 81 }
 0x134   :  { %670 = vsyncpa [#allocation3], 1 }
 0x135   :  { %672 = vsyncpa [#allocation3 + $0x1], 1 }

</bundles_post_ra>
